<compile_context>
chip_gen: v7x
topology: tpu7x:2x2x1
jax: 0.10.0
libtpu: 0.0.40
codegen_flags: <defaults>
</compile_context>

<pallas_src>
import math

import jax
import jax.numpy as jnp
from jax.experimental import pallas as pl
from jax.experimental.pallas import tpu as pltpu


_LANES = 1024                        # lane-dense width: large multiple of 128
_ROW_ALIGN = 32                      # sublane-safe for f32 (8), bf16 (16), int8 (32)
_TARGET_TILE_BYTES = 2 * 1024 * 1024  # ~2 MiB per block: amortizes grid overhead,
                                      # fits double-buffered in+out on v5e..v7x


def _relu_kernel(x_ref, o_ref):
    # Elementwise ReLU on the whole VMEM tile (VPU max against 0).
    o_ref[...] = jnp.maximum(x_ref[...], jnp.zeros((), x_ref.dtype))


def _pick_tiling(total_elems: int, itemsize: int):
    """Byte-budgeted row tiling for a lane-dense (rows, _LANES) slab."""
    rows_needed = pl.cdiv(total_elems, _LANES)

    # ~2 MiB per block, row count a multiple of the sublane alignment.
    tile_rows = (_TARGET_TILE_BYTES // (_LANES * itemsize)) // _ROW_ALIGN * _ROW_ALIGN
    tile_rows = max(_ROW_ALIGN, tile_rows)

    if rows_needed <= tile_rows:
        # Small input: single block, minimal padding (rounded to alignment).
        tile_rows = pl.cdiv(rows_needed, _ROW_ALIGN) * _ROW_ALIGN

    rows_padded = pl.cdiv(rows_needed, tile_rows) * tile_rows
    return tile_rows, rows_padded


@jax.jit
def relu_pallas(x: jax.Array) -> jax.Array:
    """ReLU(x) for any tensor (NCHW here), computed in a Pallas TPU kernel."""
    orig_shape = x.shape
    dtype = x.dtype
    total = math.prod(orig_shape)
    itemsize = jnp.dtype(dtype).itemsize

    tile_rows, rows_padded = _pick_tiling(total, itemsize)
    padded_total = rows_padded * _LANES

    # Flatten to a lane-dense 2-D slab; pad the tail so the row-grid is exact.
    x_flat = x.reshape(-1)
    if padded_total != total:
        x_flat = jnp.pad(x_flat, (0, padded_total - total))
    x2d = x_flat.reshape(rows_padded, _LANES)

    grid = (rows_padded // tile_rows,)
    tile_bytes = tile_rows * _LANES * itemsize
    # Double-buffered input + output blocks plus headroom for compiler temps,
    # capped well under v7x's 64 MiB per-core VMEM.
    vmem_limit = min(4 * tile_bytes + (8 << 20), 60 << 20)

    out2d = pl.pallas_call(
        _relu_kernel,
        out_shape=jax.ShapeDtypeStruct((rows_padded, _LANES), dtype),
        grid_spec=pltpu.PrefetchScalarGridSpec(
            num_scalar_prefetch=0,
            grid=grid,
            in_specs=[pl.BlockSpec((tile_rows, _LANES), lambda i: (i, 0))],
            out_specs=pl.BlockSpec((tile_rows, _LANES), lambda i: (i, 0)),
        ),
        compiler_params=pltpu.CompilerParams(
            dimension_semantics=("parallel",),  # independent blocks -> megacore split
            vmem_limit_bytes=vmem_limit,
        ),
        # ReLU is in-place safe: reuse the (intermediate) input HBM buffer.
        input_output_aliases={0: 0},
    )(x2d)

    out_flat = out2d.reshape(-1)
    if padded_total != total:
        out_flat = out_flat[:total]
    return out_flat.reshape(orig_shape)


if __name__ == "__main__":
    key = jax.random.PRNGKey(0)
    # Same NCHW activation shape as the module's input x30 (small: ~0.6 MB).
    x = jax.random.normal(key, (1, 48, 56, 56), dtype=jnp.float32)

    y = relu_pallas(x)
    jax.block_until_ready(y)

    # Correctness check against the pure-JAX reference (bit-exact for ReLU).
    ref = jnp.maximum(x, 0.0)
    assert y.shape == x.shape and y.dtype == x.dtype
    assert jnp.array_equal(y, ref)

    print("KERNEL_OK")
</pallas_src>

<mosaic_0001>
module attributes {stable_mosaic.version = 11 : i64} {
  func.func @_relu_kernel(%arg0: i32, %arg1: memref<160x1024xf32, #tpu.memory_space<vmem>>, %arg2: memref<160x1024xf32, #tpu.memory_space<vmem>>) attributes {dimension_semantics = [#tpu.dimension_semantics<parallel>], iteration_bounds = array<i64: 1>, scalar_prefetch = 0 : i64, scratch_operands = 0 : i64, tpu.core_type = #tpu.core_type<tc>, window_params = [{transform_indices = @transform_0, window_bounds = array<i64: 160, 1024>}, {transform_indices = @transform_1, window_bounds = array<i64: 160, 1024>}]} {
    %c0 = arith.constant 0 : index
    %c0_0 = arith.constant 0 : index
    %0 = vector.load %arg1[%c0, %c0_0] : memref<160x1024xf32, #tpu.memory_space<vmem>>, vector<160x1024xf32>
    %cst = arith.constant 0.000000e+00 : f32
    %1 = vector.broadcast %cst : f32 to vector<160x1024xf32>
    %2 = arith.maximumf %0, %1 : vector<160x1024xf32>
    %c0_1 = arith.constant 0 : index
    %c0_2 = arith.constant 0 : index
    %3 = vector.load %arg2[%c0_1, %c0_2] : memref<160x1024xf32, #tpu.memory_space<vmem>>, vector<160x1024xf32>
    tpu.vector_store %arg2[%c0_1, %c0_2], %2 {strides = array<i32>} : memref<160x1024xf32, #tpu.memory_space<vmem>>, vector<160x1024xf32>,
    return
  }
  func.func @transform_0(%arg0: i32) -> (i32, i32) {
    %c0_i32 = arith.constant 0 : i32
    %c0_i32_0 = arith.constant 0 : i32
    return %arg0, %c0_i32 : i32, i32
  }
  func.func @transform_1(%arg0: i32) -> (i32, i32) {
    %c0_i32 = arith.constant 0 : i32
    %c0_i32_0 = arith.constant 0 : i32
    return %arg0, %c0_i32 : i32, i32
  }
}

</mosaic_0001>

<bundles_post_ra>
// kernel: relu_pallas.1
= control target key start
LH: loop header
LB: loop body
LE: loop exit
PB: predicated region body
PF: predicated region fallthrough
CT: control target
= control target key end

     0   :  { %s1462_s0 = inlined_call_operand.vmem [shape: f32[160,1024], index: 0, kind: input, shape index: {}, may-alias: {0,1}]   ;;  %s1463_s1 = inlined_call_operand.vmem [shape: f32[160,1024], index: 1, kind: output, shape index: {}, may-alias: {0,1}]  }
   0x1   :  { %v8_v0 = vld [vmem:[%s1462_s0] sm:$0xff]  ;;  %v9_v1 = vld [vmem:[%s1462_s0 + $0x8] sm:$0xff]  ;;  %v10_v2 = vld [vmem:[%s1462_s0 + $0x10] sm:$0xff] }
   0x2   :  { %v168_v3 = vmax.f32 %v8_v0, 0.0  ;;  %v169_v4 = vmax.f32 %v9_v1, 0.0  ;;  %v170_v5 = vmax.f32 %v10_v2, 0.0  ;;  %v11_v6 = vld [vmem:[%s1462_s0 + $0x18] sm:$0xff]  ;;  %v12_v7 = vld [vmem:[%s1462_s0 + $0x20] sm:$0xff]  ;;  %v13_v8 = vld [vmem:[%s1462_s0 + $0x28] sm:$0xff] }
   0x3   :  { %v171_v9 = vmax.f32 %v11_v6, 0.0  ;;  %v172_v10 = vmax.f32 %v12_v7, 0.0  ;;  %v173_v11 = vmax.f32 %v13_v8, 0.0  ;;  %v14_v12 = vld [vmem:[%s1462_s0 + $0x30] sm:$0xff]  ;;  %v15_v13 = vld [vmem:[%s1462_s0 + $0x38] sm:$0xff]  ;;  %v16_v14 = vld [vmem:[%s1462_s0 + $0x40] sm:$0xff] }
   0x4   :  { %328 = vst [vmem:[%s1463_s1] sm:$0xff] %v168_v3  ;;  %329 = vst [vmem:[%s1463_s1 + $0x8] sm:$0xff] %v169_v4  ;;  %v174_v15 = vmax.f32 %v14_v12, 0.0  ;;  %v175_v16 = vmax.f32 %v15_v13, 0.0  ;;  %v176_v17 = vmax.f32 %v16_v14, 0.0 }
   0x5   :  { %330 = vst [vmem:[%s1463_s1 + $0x10] sm:$0xff] %v170_v5 }
   0xc   :  { %v17_v18 = vld [vmem:[%s1462_s0 + $0x48] sm:$0xff]  ;;  %v18_v19 = vld [vmem:[%s1462_s0 + $0x50] sm:$0xff]  ;;  %v19_v20 = vld [vmem:[%s1462_s0 + $0x58] sm:$0xff] }
   0xd   :  { %331 = vst [vmem:[%s1463_s1 + $0x18] sm:$0xff] %v171_v9  ;;  %332 = vst [vmem:[%s1463_s1 + $0x20] sm:$0xff] %v172_v10  ;;  %v177_v21 = vmax.f32 %v17_v18, 0.0  ;;  %v178_v22 = vmax.f32 %v18_v19, 0.0  ;;  %v179_v23 = vmax.f32 %v19_v20, 0.0 }
   0xe   :  { %333 = vst [vmem:[%s1463_s1 + $0x28] sm:$0xff] %v173_v11 }
  0x15   :  { %v20_v24 = vld [vmem:[%s1462_s0 + $0x60] sm:$0xff]  ;;  %v21_v25 = vld [vmem:[%s1462_s0 + $0x68] sm:$0xff]  ;;  %v22_v26 = vld [vmem:[%s1462_s0 + $0x70] sm:$0xff] }
  0x16   :  { %334 = vst [vmem:[%s1463_s1 + $0x30] sm:$0xff] %v174_v15  ;;  %335 = vst [vmem:[%s1463_s1 + $0x38] sm:$0xff] %v175_v16  ;;  %v180_v27 = vmax.f32 %v20_v24, 0.0  ;;  %v181_v28 = vmax.f32 %v21_v25, 0.0  ;;  %v182_v29 = vmax.f32 %v22_v26, 0.0 }
  0x17   :  { %336 = vst [vmem:[%s1463_s1 + $0x40] sm:$0xff] %v176_v17 }
  0x1e   :  { %v23_v30 = vld [vmem:[%s1462_s0 + $0x78] sm:$0xff]  ;;  %v24_v31 = vld [vmem:[%s1462_s0 + $0x80] sm:$0xff]  ;;  %v25_v32 = vld [vmem:[%s1462_s0 + $0x88] sm:$0xff] }
  0x1f   :  { %337 = vst [vmem:[%s1463_s1 + $0x48] sm:$0xff] %v177_v21  ;;  %338 = vst [vmem:[%s1463_s1 + $0x50] sm:$0xff] %v178_v22  ;;  %v183_v33 = vmax.f32 %v23_v30, 0.0  ;;  %v184_v34 = vmax.f32 %v24_v31, 0.0  ;;  %v185_v35 = vmax.f32 %v25_v32, 0.0 }
  0x20   :  { %339 = vst [vmem:[%s1463_s1 + $0x58] sm:$0xff] %v179_v23 }
  0x27   :  { %v26_v36 = vld [vmem:[%s1462_s0 + $0x90] sm:$0xff]  ;;  %v27_v37 = vld [vmem:[%s1462_s0 + $0x98] sm:$0xff]  ;;  %v28_v38 = vld [vmem:[%s1462_s0 + $0xa0] sm:$0xff] }
  0x28   :  { %340 = vst [vmem:[%s1463_s1 + $0x60] sm:$0xff] %v180_v27  ;;  %341 = vst [vmem:[%s1463_s1 + $0x68] sm:$0xff] %v181_v28  ;;  %v186_v39 = vmax.f32 %v26_v36, 0.0  ;;  %v187_v40 = vmax.f32 %v27_v37, 0.0  ;;  %v188_v41 = vmax.f32 %v28_v38, 0.0 }
  0x29   :  { %342 = vst [vmem:[%s1463_s1 + $0x70] sm:$0xff] %v182_v29 }
  0x30   :  { %v29_v42 = vld [vmem:[%s1462_s0 + $0xa8] sm:$0xff]  ;;  %v30_v43 = vld [vmem:[%s1462_s0 + $0xb0] sm:$0xff]  ;;  %v31_v44 = vld [vmem:[%s1462_s0 + $0xb8] sm:$0xff] }
  0x31   :  { %343 = vst [vmem:[%s1463_s1 + $0x78] sm:$0xff] %v183_v33  ;;  %344 = vst [vmem:[%s1463_s1 + $0x80] sm:$0xff] %v184_v34  ;;  %v189_v45 = vmax.f32 %v29_v42, 0.0  ;;  %v190_v46 = vmax.f32 %v30_v43, 0.0  ;;  %v191_v47 = vmax.f32 %v31_v44, 0.0 }
  0x32   :  { %345 = vst [vmem:[%s1463_s1 + $0x88] sm:$0xff] %v185_v35 }
  0x39   :  { %v32_v48 = vld [vmem:[%s1462_s0 + $0xc0] sm:$0xff]  ;;  %v33_v49 = vld [vmem:[%s1462_s0 + $0xc8] sm:$0xff]  ;;  %v34_v50 = vld [vmem:[%s1462_s0 + $0xd0] sm:$0xff] }
  0x3a   :  { %346 = vst [vmem:[%s1463_s1 + $0x90] sm:$0xff] %v186_v39  ;;  %347 = vst [vmem:[%s1463_s1 + $0x98] sm:$0xff] %v187_v40  ;;  %v192_v51 = vmax.f32 %v32_v48, 0.0  ;;  %v193_v52 = vmax.f32 %v33_v49, 0.0  ;;  %v194_v53 = vmax.f32 %v34_v50, 0.0 }
  0x3b   :  { %348 = vst [vmem:[%s1463_s1 + $0xa0] sm:$0xff] %v188_v41 }
  0x42   :  { %v35_v54 = vld [vmem:[%s1462_s0 + $0xd8] sm:$0xff]  ;;  %v36_v55 = vld [vmem:[%s1462_s0 + $0xe0] sm:$0xff]  ;;  %v37_v56 = vld [vmem:[%s1462_s0 + $0xe8] sm:$0xff] }
  0x43   :  { %349 = vst [vmem:[%s1463_s1 + $0xa8] sm:$0xff] %v189_v45  ;;  %350 = vst [vmem:[%s1463_s1 + $0xb0] sm:$0xff] %v190_v46  ;;  %v195_v57 = vmax.f32 %v35_v54, 0.0  ;;  %v196_v58 = vmax.f32 %v36_v55, 0.0  ;;  %v197_v59 = vmax.f32 %v37_v56, 0.0 }
  0x44   :  { %351 = vst [vmem:[%s1463_s1 + $0xb8] sm:$0xff] %v191_v47 }
  0x4b   :  { %v38_v60 = vld [vmem:[%s1462_s0 + $0xf0] sm:$0xff]  ;;  %v39_v61 = vld [vmem:[%s1462_s0 + $0xf8] sm:$0xff]  ;;  %v40_v62 = vld [vmem:[%s1462_s0 + $0x100] sm:$0xff] }
  0x4c   :  { %352 = vst [vmem:[%s1463_s1 + $0xc0] sm:$0xff] %v192_v51  ;;  %353 = vst [vmem:[%s1463_s1 + $0xc8] sm:$0xff] %v193_v52  ;;  %v198_v63 = vmax.f32 %v38_v60, 0.0  ;;  %v199_v0 = vmax.f32 %v39_v61, 0.0  ;;  %v200_v1 = vmax.f32 %v40_v62, 0.0 }
  0x4d   :  { %354 = vst [vmem:[%s1463_s1 + $0xd0] sm:$0xff] %v194_v53 }
  0x54   :  { %v41_v2 = vld [vmem:[%s1462_s0 + $0x108] sm:$0xff]  ;;  %v42_v3 = vld [vmem:[%s1462_s0 + $0x110] sm:$0xff]  ;;  %v43_v4 = vld [vmem:[%s1462_s0 + $0x118] sm:$0xff] }
  0x55   :  { %355 = vst [vmem:[%s1463_s1 + $0xd8] sm:$0xff] %v195_v57  ;;  %356 = vst [vmem:[%s1463_s1 + $0xe0] sm:$0xff] %v196_v58  ;;  %v201_v5 = vmax.f32 %v41_v2, 0.0  ;;  %v202_v6 = vmax.f32 %v42_v3, 0.0  ;;  %v203_v7 = vmax.f32 %v43_v4, 0.0 }
  0x56   :  { %357 = vst [vmem:[%s1463_s1 + $0xe8] sm:$0xff] %v197_v59 }
  0x5d   :  { %v44_v8 = vld [vmem:[%s1462_s0 + $0x120] sm:$0xff]  ;;  %v45_v9 = vld [vmem:[%s1462_s0 + $0x128] sm:$0xff]  ;;  %v46_v10 = vld [vmem:[%s1462_s0 + $0x130] sm:$0xff] }
  0x5e   :  { %358 = vst [vmem:[%s1463_s1 + $0xf0] sm:$0xff] %v198_v63  ;;  %359 = vst [vmem:[%s1463_s1 + $0xf8] sm:$0xff] %v199_v0  ;;  %v204_v11 = vmax.f32 %v44_v8, 0.0  ;;  %v205_v12 = vmax.f32 %v45_v9, 0.0  ;;  %v206_v13 = vmax.f32 %v46_v10, 0.0 }
  0x5f   :  { %360 = vst [vmem:[%s1463_s1 + $0x100] sm:$0xff] %v200_v1 }
  0x66   :  { %v47_v14 = vld [vmem:[%s1462_s0 + $0x138] sm:$0xff]  ;;  %v48_v15 = vld [vmem:[%s1462_s0 + $0x140] sm:$0xff]  ;;  %v49_v16 = vld [vmem:[%s1462_s0 + $0x148] sm:$0xff] }
  0x67   :  { %361 = vst [vmem:[%s1463_s1 + $0x108] sm:$0xff] %v201_v5  ;;  %362 = vst [vmem:[%s1463_s1 + $0x110] sm:$0xff] %v202_v6  ;;  %v207_v17 = vmax.f32 %v47_v14, 0.0  ;;  %v208_v18 = vmax.f32 %v48_v15, 0.0  ;;  %v209_v19 = vmax.f32 %v49_v16, 0.0 }
  0x68   :  { %363 = vst [vmem:[%s1463_s1 + $0x118] sm:$0xff] %v203_v7 }
  0x6f   :  { %v50_v20 = vld [vmem:[%s1462_s0 + $0x150] sm:$0xff]  ;;  %v51_v21 = vld [vmem:[%s1462_s0 + $0x158] sm:$0xff]  ;;  %v52_v22 = vld [vmem:[%s1462_s0 + $0x160] sm:$0xff] }
  0x70   :  { %364 = vst [vmem:[%s1463_s1 + $0x120] sm:$0xff] %v204_v11  ;;  %365 = vst [vmem:[%s1463_s1 + $0x128] sm:$0xff] %v205_v12  ;;  %v210_v23 = vmax.f32 %v50_v20, 0.0  ;;  %v211_v24 = vmax.f32 %v51_v21, 0.0  ;;  %v212_v25 = vmax.f32 %v52_v22, 0.0 }
  0x71   :  { %366 = vst [vmem:[%s1463_s1 + $0x130] sm:$0xff] %v206_v13 }
  0x78   :  { %v53_v26 = vld [vmem:[%s1462_s0 + $0x168] sm:$0xff]  ;;  %v54_v27 = vld [vmem:[%s1462_s0 + $0x170] sm:$0xff]  ;;  %v55_v28 = vld [vmem:[%s1462_s0 + $0x178] sm:$0xff] }
  0x79   :  { %367 = vst [vmem:[%s1463_s1 + $0x138] sm:$0xff] %v207_v17  ;;  %368 = vst [vmem:[%s1463_s1 + $0x140] sm:$0xff] %v208_v18  ;;  %v213_v29 = vmax.f32 %v53_v26, 0.0  ;;  %v214_v30 = vmax.f32 %v54_v27, 0.0  ;;  %v215_v31 = vmax.f32 %v55_v28, 0.0 }
  0x7a   :  { %369 = vst [vmem:[%s1463_s1 + $0x148] sm:$0xff] %v209_v19 }
  0x81   :  { %v56_v32 = vld [vmem:[%s1462_s0 + $0x180] sm:$0xff]  ;;  %v57_v33 = vld [vmem:[%s1462_s0 + $0x188] sm:$0xff]  ;;  %v58_v34 = vld [vmem:[%s1462_s0 + $0x190] sm:$0xff] }
  0x82   :  { %370 = vst [vmem:[%s1463_s1 + $0x150] sm:$0xff] %v210_v23  ;;  %371 = vst [vmem:[%s1463_s1 + $0x158] sm:$0xff] %v211_v24  ;;  %v216_v35 = vmax.f32 %v56_v32, 0.0  ;;  %v217_v36 = vmax.f32 %v57_v33, 0.0  ;;  %v218_v37 = vmax.f32 %v58_v34, 0.0 }
  0x83   :  { %372 = vst [vmem:[%s1463_s1 + $0x160] sm:$0xff] %v212_v25 }
  0x8a   :  { %v59_v38 = vld [vmem:[%s1462_s0 + $0x198] sm:$0xff]  ;;  %v60_v39 = vld [vmem:[%s1462_s0 + $0x1a0] sm:$0xff]  ;;  %v61_v40 = vld [vmem:[%s1462_s0 + $0x1a8] sm:$0xff] }
  0x8b   :  { %373 = vst [vmem:[%s1463_s1 + $0x168] sm:$0xff] %v213_v29  ;;  %374 = vst [vmem:[%s1463_s1 + $0x170] sm:$0xff] %v214_v30  ;;  %v219_v41 = vmax.f32 %v59_v38, 0.0  ;;  %v220_v42 = vmax.f32 %v60_v39, 0.0  ;;  %v221_v43 = vmax.f32 %v61_v40, 0.0 }
  0x8c   :  { %375 = vst [vmem:[%s1463_s1 + $0x178] sm:$0xff] %v215_v31 }
  0x93   :  { %v62_v44 = vld [vmem:[%s1462_s0 + $0x1b0] sm:$0xff]  ;;  %v63_v45 = vld [vmem:[%s1462_s0 + $0x1b8] sm:$0xff]  ;;  %v64_v46 = vld [vmem:[%s1462_s0 + $0x1c0] sm:$0xff] }
  0x94   :  { %376 = vst [vmem:[%s1463_s1 + $0x180] sm:$0xff] %v216_v35  ;;  %377 = vst [vmem:[%s1463_s1 + $0x188] sm:$0xff] %v217_v36  ;;  %v222_v47 = vmax.f32 %v62_v44, 0.0  ;;  %v223_v48 = vmax.f32 %v63_v45, 0.0  ;;  %v224_v49 = vmax.f32 %v64_v46, 0.0 }
  0x95   :  { %378 = vst [vmem:[%s1463_s1 + $0x190] sm:$0xff] %v218_v37 }
  0x9c   :  { %v65_v50 = vld [vmem:[%s1462_s0 + $0x1c8] sm:$0xff]  ;;  %v66_v51 = vld [vmem:[%s1462_s0 + $0x1d0] sm:$0xff]  ;;  %v67_v52 = vld [vmem:[%s1462_s0 + $0x1d8] sm:$0xff] }
  0x9d   :  { %379 = vst [vmem:[%s1463_s1 + $0x198] sm:$0xff] %v219_v41  ;;  %380 = vst [vmem:[%s1463_s1 + $0x1a0] sm:$0xff] %v220_v42  ;;  %v225_v53 = vmax.f32 %v65_v50, 0.0  ;;  %v226_v54 = vmax.f32 %v66_v51, 0.0  ;;  %v227_v55 = vmax.f32 %v67_v52, 0.0 }
  0x9e   :  { %381 = vst [vmem:[%s1463_s1 + $0x1a8] sm:$0xff] %v221_v43 }
  0xa5   :  { %v68_v56 = vld [vmem:[%s1462_s0 + $0x1e0] sm:$0xff]  ;;  %v69_v57 = vld [vmem:[%s1462_s0 + $0x1e8] sm:$0xff]  ;;  %v70_v58 = vld [vmem:[%s1462_s0 + $0x1f0] sm:$0xff] }
  0xa6   :  { %382 = vst [vmem:[%s1463_s1 + $0x1b0] sm:$0xff] %v222_v47  ;;  %383 = vst [vmem:[%s1463_s1 + $0x1b8] sm:$0xff] %v223_v48  ;;  %v228_v59 = vmax.f32 %v68_v56, 0.0  ;;  %v229_v60 = vmax.f32 %v69_v57, 0.0  ;;  %v230_v61 = vmax.f32 %v70_v58, 0.0 }
  0xa7   :  { %384 = vst [vmem:[%s1463_s1 + $0x1c0] sm:$0xff] %v224_v49 }
  0xae   :  { %v71_v62 = vld [vmem:[%s1462_s0 + $0x1f8] sm:$0xff]  ;;  %v72_v63 = vld [vmem:[%s1462_s0 + $0x200] sm:$0xff]  ;;  %v73_v0 = vld [vmem:[%s1462_s0 + $0x208] sm:$0xff] }
  0xaf   :  { %385 = vst [vmem:[%s1463_s1 + $0x1c8] sm:$0xff] %v225_v53  ;;  %386 = vst [vmem:[%s1463_s1 + $0x1d0] sm:$0xff] %v226_v54  ;;  %v231_v1 = vmax.f32 %v71_v62, 0.0  ;;  %v232_v2 = vmax.f32 %v72_v63, 0.0  ;;  %v233_v3 = vmax.f32 %v73_v0, 0.0 }
  0xb0   :  { %387 = vst [vmem:[%s1463_s1 + $0x1d8] sm:$0xff] %v227_v55 }
  0xb7   :  { %v74_v4 = vld [vmem:[%s1462_s0 + $0x210] sm:$0xff]  ;;  %v75_v5 = vld [vmem:[%s1462_s0 + $0x218] sm:$0xff]  ;;  %v76_v6 = vld [vmem:[%s1462_s0 + $0x220] sm:$0xff] }
  0xb8   :  { %388 = vst [vmem:[%s1463_s1 + $0x1e0] sm:$0xff] %v228_v59  ;;  %389 = vst [vmem:[%s1463_s1 + $0x1e8] sm:$0xff] %v229_v60  ;;  %v234_v7 = vmax.f32 %v74_v4, 0.0  ;;  %v235_v8 = vmax.f32 %v75_v5, 0.0  ;;  %v236_v9 = vmax.f32 %v76_v6, 0.0 }
  0xb9   :  { %390 = vst [vmem:[%s1463_s1 + $0x1f0] sm:$0xff] %v230_v61 }
  0xc0   :  { %v77_v10 = vld [vmem:[%s1462_s0 + $0x228] sm:$0xff]  ;;  %v78_v11 = vld [vmem:[%s1462_s0 + $0x230] sm:$0xff]  ;;  %v79_v12 = vld [vmem:[%s1462_s0 + $0x238] sm:$0xff] }
  0xc1   :  { %391 = vst [vmem:[%s1463_s1 + $0x1f8] sm:$0xff] %v231_v1  ;;  %392 = vst [vmem:[%s1463_s1 + $0x200] sm:$0xff] %v232_v2  ;;  %v237_v13 = vmax.f32 %v77_v10, 0.0  ;;  %v238_v14 = vmax.f32 %v78_v11, 0.0  ;;  %v239_v15 = vmax.f32 %v79_v12, 0.0 }
  0xc2   :  { %393 = vst [vmem:[%s1463_s1 + $0x208] sm:$0xff] %v233_v3 }
  0xc9   :  { %v80_v16 = vld [vmem:[%s1462_s0 + $0x240] sm:$0xff]  ;;  %v81_v17 = vld [vmem:[%s1462_s0 + $0x248] sm:$0xff]  ;;  %v82_v18 = vld [vmem:[%s1462_s0 + $0x250] sm:$0xff] }
  0xca   :  { %394 = vst [vmem:[%s1463_s1 + $0x210] sm:$0xff] %v234_v7  ;;  %395 = vst [vmem:[%s1463_s1 + $0x218] sm:$0xff] %v235_v8  ;;  %v240_v19 = vmax.f32 %v80_v16, 0.0  ;;  %v241_v20 = vmax.f32 %v81_v17, 0.0  ;;  %v242_v21 = vmax.f32 %v82_v18, 0.0 }
  0xcb   :  { %396 = vst [vmem:[%s1463_s1 + $0x220] sm:$0xff] %v236_v9 }
  0xd2   :  { %v83_v22 = vld [vmem:[%s1462_s0 + $0x258] sm:$0xff]  ;;  %v84_v23 = vld [vmem:[%s1462_s0 + $0x260] sm:$0xff]  ;;  %v85_v24 = vld [vmem:[%s1462_s0 + $0x268] sm:$0xff] }
  0xd3   :  { %397 = vst [vmem:[%s1463_s1 + $0x228] sm:$0xff] %v237_v13  ;;  %398 = vst [vmem:[%s1463_s1 + $0x230] sm:$0xff] %v238_v14  ;;  %v243_v25 = vmax.f32 %v83_v22, 0.0  ;;  %v244_v26 = vmax.f32 %v84_v23, 0.0  ;;  %v245_v27 = vmax.f32 %v85_v24, 0.0 }
  0xd4   :  { %399 = vst [vmem:[%s1463_s1 + $0x238] sm:$0xff] %v239_v15 }
  0xdb   :  { %v86_v28 = vld [vmem:[%s1462_s0 + $0x270] sm:$0xff]  ;;  %v87_v29 = vld [vmem:[%s1462_s0 + $0x278] sm:$0xff]  ;;  %v88_v30 = vld [vmem:[%s1462_s0 + $0x280] sm:$0xff] }
  0xdc   :  { %400 = vst [vmem:[%s1463_s1 + $0x240] sm:$0xff] %v240_v19  ;;  %401 = vst [vmem:[%s1463_s1 + $0x248] sm:$0xff] %v241_v20  ;;  %v246_v31 = vmax.f32 %v86_v28, 0.0  ;;  %v247_v32 = vmax.f32 %v87_v29, 0.0  ;;  %v248_v33 = vmax.f32 %v88_v30, 0.0 }
  0xdd   :  { %402 = vst [vmem:[%s1463_s1 + $0x250] sm:$0xff] %v242_v21 }
  0xe4   :  { %v89_v34 = vld [vmem:[%s1462_s0 + $0x288] sm:$0xff]  ;;  %v90_v35 = vld [vmem:[%s1462_s0 + $0x290] sm:$0xff]  ;;  %v91_v36 = vld [vmem:[%s1462_s0 + $0x298] sm:$0xff] }
  0xe5   :  { %403 = vst [vmem:[%s1463_s1 + $0x258] sm:$0xff] %v243_v25  ;;  %404 = vst [vmem:[%s1463_s1 + $0x260] sm:$0xff] %v244_v26  ;;  %v249_v37 = vmax.f32 %v89_v34, 0.0  ;;  %v250_v38 = vmax.f32 %v90_v35, 0.0  ;;  %v251_v39 = vmax.f32 %v91_v36, 0.0 }
  0xe6   :  { %405 = vst [vmem:[%s1463_s1 + $0x268] sm:$0xff] %v245_v27 }
  0xed   :  { %v92_v40 = vld [vmem:[%s1462_s0 + $0x2a0] sm:$0xff]  ;;  %v93_v41 = vld [vmem:[%s1462_s0 + $0x2a8] sm:$0xff]  ;;  %v94_v42 = vld [vmem:[%s1462_s0 + $0x2b0] sm:$0xff] }
  0xee   :  { %406 = vst [vmem:[%s1463_s1 + $0x270] sm:$0xff] %v246_v31  ;;  %407 = vst [vmem:[%s1463_s1 + $0x278] sm:$0xff] %v247_v32  ;;  %v252_v43 = vmax.f32 %v92_v40, 0.0  ;;  %v253_v44 = vmax.f32 %v93_v41, 0.0  ;;  %v254_v45 = vmax.f32 %v94_v42, 0.0 }
  0xef   :  { %408 = vst [vmem:[%s1463_s1 + $0x280] sm:$0xff] %v248_v33 }
  0xf6   :  { %v95_v46 = vld [vmem:[%s1462_s0 + $0x2b8] sm:$0xff]  ;;  %v96_v47 = vld [vmem:[%s1462_s0 + $0x2c0] sm:$0xff]  ;;  %v97_v48 = vld [vmem:[%s1462_s0 + $0x2c8] sm:$0xff] }
  0xf7   :  { %409 = vst [vmem:[%s1463_s1 + $0x288] sm:$0xff] %v249_v37  ;;  %410 = vst [vmem:[%s1463_s1 + $0x290] sm:$0xff] %v250_v38  ;;  %v255_v49 = vmax.f32 %v95_v46, 0.0  ;;  %v256_v50 = vmax.f32 %v96_v47, 0.0  ;;  %v257_v51 = vmax.f32 %v97_v48, 0.0 }
  0xf8   :  { %411 = vst [vmem:[%s1463_s1 + $0x298] sm:$0xff] %v251_v39 }
  0xff   :  { %v98_v52 = vld [vmem:[%s1462_s0 + $0x2d0] sm:$0xff]  ;;  %v99_v53 = vld [vmem:[%s1462_s0 + $0x2d8] sm:$0xff]  ;;  %v100_v54 = vld [vmem:[%s1462_s0 + $0x2e0] sm:$0xff] }
 0x100   :  { %412 = vst [vmem:[%s1463_s1 + $0x2a0] sm:$0xff] %v252_v43  ;;  %413 = vst [vmem:[%s1463_s1 + $0x2a8] sm:$0xff] %v253_v44  ;;  %v258_v55 = vmax.f32 %v98_v52, 0.0  ;;  %v259_v56 = vmax.f32 %v99_v53, 0.0  ;;  %v260_v57 = vmax.f32 %v100_v54, 0.0 }
 0x101   :  { %414 = vst [vmem:[%s1463_s1 + $0x2b0] sm:$0xff] %v254_v45 }
 0x108   :  { %v101_v58 = vld [vmem:[%s1462_s0 + $0x2e8] sm:$0xff]  ;;  %v102_v59 = vld [vmem:[%s1462_s0 + $0x2f0] sm:$0xff]  ;;  %v103_v60 = vld [vmem:[%s1462_s0 + $0x2f8] sm:$0xff] }
 0x109   :  { %415 = vst [vmem:[%s1463_s1 + $0x2b8] sm:$0xff] %v255_v49  ;;  %416 = vst [vmem:[%s1463_s1 + $0x2c0] sm:$0xff] %v256_v50  ;;  %v261_v61 = vmax.f32 %v101_v58, 0.0  ;;  %v262_v62 = vmax.f32 %v102_v59, 0.0  ;;  %v263_v63 = vmax.f32 %v103_v60, 0.0 }
 0x10a   :  { %417 = vst [vmem:[%s1463_s1 + $0x2c8] sm:$0xff] %v257_v51 }
 0x111   :  { %v104_v0 = vld [vmem:[%s1462_s0 + $0x300] sm:$0xff]  ;;  %v105_v1 = vld [vmem:[%s1462_s0 + $0x308] sm:$0xff]  ;;  %v106_v2 = vld [vmem:[%s1462_s0 + $0x310] sm:$0xff] }
 0x112   :  { %418 = vst [vmem:[%s1463_s1 + $0x2d0] sm:$0xff] %v258_v55  ;;  %419 = vst [vmem:[%s1463_s1 + $0x2d8] sm:$0xff] %v259_v56  ;;  %v264_v3 = vmax.f32 %v104_v0, 0.0  ;;  %v265_v4 = vmax.f32 %v105_v1, 0.0  ;;  %v266_v5 = vmax.f32 %v106_v2, 0.0 }
 0x113   :  { %420 = vst [vmem:[%s1463_s1 + $0x2e0] sm:$0xff] %v260_v57 }
 0x11a   :  { %v107_v6 = vld [vmem:[%s1462_s0 + $0x318] sm:$0xff]  ;;  %v108_v7 = vld [vmem:[%s1462_s0 + $0x320] sm:$0xff]  ;;  %v109_v8 = vld [vmem:[%s1462_s0 + $0x328] sm:$0xff] }
 0x11b   :  { %421 = vst [vmem:[%s1463_s1 + $0x2e8] sm:$0xff] %v261_v61  ;;  %422 = vst [vmem:[%s1463_s1 + $0x2f0] sm:$0xff] %v262_v62  ;;  %v267_v9 = vmax.f32 %v107_v6, 0.0  ;;  %v268_v10 = vmax.f32 %v108_v7, 0.0  ;;  %v269_v11 = vmax.f32 %v109_v8, 0.0 }
 0x11c   :  { %423 = vst [vmem:[%s1463_s1 + $0x2f8] sm:$0xff] %v263_v63 }
 0x123   :  { %v110_v12 = vld [vmem:[%s1462_s0 + $0x330] sm:$0xff]  ;;  %v111_v13 = vld [vmem:[%s1462_s0 + $0x338] sm:$0xff]  ;;  %v112_v14 = vld [vmem:[%s1462_s0 + $0x340] sm:$0xff] }
 0x124   :  { %424 = vst [vmem:[%s1463_s1 + $0x300] sm:$0xff] %v264_v3  ;;  %425 = vst [vmem:[%s1463_s1 + $0x308] sm:$0xff] %v265_v4  ;;  %v270_v15 = vmax.f32 %v110_v12, 0.0  ;;  %v271_v16 = vmax.f32 %v111_v13, 0.0  ;;  %v272_v17 = vmax.f32 %v112_v14, 0.0 }
 0x125   :  { %426 = vst [vmem:[%s1463_s1 + $0x310] sm:$0xff] %v266_v5 }
 0x12c   :  { %v113_v18 = vld [vmem:[%s1462_s0 + $0x348] sm:$0xff]  ;;  %v114_v19 = vld [vmem:[%s1462_s0 + $0x350] sm:$0xff]  ;;  %v115_v20 = vld [vmem:[%s1462_s0 + $0x358] sm:$0xff] }
 0x12d   :  { %427 = vst [vmem:[%s1463_s1 + $0x318] sm:$0xff] %v267_v9  ;;  %428 = vst [vmem:[%s1463_s1 + $0x320] sm:$0xff] %v268_v10  ;;  %v273_v21 = vmax.f32 %v113_v18, 0.0  ;;  %v274_v22 = vmax.f32 %v114_v19, 0.0  ;;  %v275_v23 = vmax.f32 %v115_v20, 0.0 }
 0x12e   :  { %429 = vst [vmem:[%s1463_s1 + $0x328] sm:$0xff] %v269_v11 }
 0x135   :  { %v116_v24 = vld [vmem:[%s1462_s0 + $0x360] sm:$0xff]  ;;  %v117_v25 = vld [vmem:[%s1462_s0 + $0x368] sm:$0xff]  ;;  %v118_v26 = vld [vmem:[%s1462_s0 + $0x370] sm:$0xff] }
 0x136   :  { %430 = vst [vmem:[%s1463_s1 + $0x330] sm:$0xff] %v270_v15  ;;  %431 = vst [vmem:[%s1463_s1 + $0x338] sm:$0xff] %v271_v16  ;;  %v276_v27 = vmax.f32 %v116_v24, 0.0  ;;  %v277_v28 = vmax.f32 %v117_v25, 0.0  ;;  %v278_v29 = vmax.f32 %v118_v26, 0.0 }
 0x137   :  { %432 = vst [vmem:[%s1463_s1 + $0x340] sm:$0xff] %v272_v17 }
 0x13e   :  { %v119_v30 = vld [vmem:[%s1462_s0 + $0x378] sm:$0xff]  ;;  %v120_v31 = vld [vmem:[%s1462_s0 + $0x380] sm:$0xff]  ;;  %v121_v32 = vld [vmem:[%s1462_s0 + $0x388] sm:$0xff] }
 0x13f   :  { %433 = vst [vmem:[%s1463_s1 + $0x348] sm:$0xff] %v273_v21  ;;  %434 = vst [vmem:[%s1463_s1 + $0x350] sm:$0xff] %v274_v22  ;;  %v279_v33 = vmax.f32 %v119_v30, 0.0  ;;  %v280_v34 = vmax.f32 %v120_v31, 0.0  ;;  %v281_v35 = vmax.f32 %v121_v32, 0.0 }
 0x140   :  { %435 = vst [vmem:[%s1463_s1 + $0x358] sm:$0xff] %v275_v23 }
 0x147   :  { %v122_v36 = vld [vmem:[%s1462_s0 + $0x390] sm:$0xff]  ;;  %v123_v37 = vld [vmem:[%s1462_s0 + $0x398] sm:$0xff]  ;;  %v124_v38 = vld [vmem:[%s1462_s0 + $0x3a0] sm:$0xff] }
 0x148   :  { %436 = vst [vmem:[%s1463_s1 + $0x360] sm:$0xff] %v276_v27  ;;  %437 = vst [vmem:[%s1463_s1 + $0x368] sm:$0xff] %v277_v28  ;;  %v282_v39 = vmax.f32 %v122_v36, 0.0  ;;  %v283_v40 = vmax.f32 %v123_v37, 0.0  ;;  %v284_v41 = vmax.f32 %v124_v38, 0.0 }
 0x149   :  { %438 = vst [vmem:[%s1463_s1 + $0x370] sm:$0xff] %v278_v29 }
 0x150   :  { %v125_v42 = vld [vmem:[%s1462_s0 + $0x3a8] sm:$0xff]  ;;  %v126_v43 = vld [vmem:[%s1462_s0 + $0x3b0] sm:$0xff]  ;;  %v127_v44 = vld [vmem:[%s1462_s0 + $0x3b8] sm:$0xff] }
 0x151   :  { %439 = vst [vmem:[%s1463_s1 + $0x378] sm:$0xff] %v279_v33  ;;  %440 = vst [vmem:[%s1463_s1 + $0x380] sm:$0xff] %v280_v34  ;;  %v285_v45 = vmax.f32 %v125_v42, 0.0  ;;  %v286_v46 = vmax.f32 %v126_v43, 0.0  ;;  %v287_v47 = vmax.f32 %v127_v44, 0.0 }
 0x152   :  { %441 = vst [vmem:[%s1463_s1 + $0x388] sm:$0xff] %v281_v35 }
 0x159   :  { %v128_v48 = vld [vmem:[%s1462_s0 + $0x3c0] sm:$0xff]  ;;  %v129_v49 = vld [vmem:[%s1462_s0 + $0x3c8] sm:$0xff]  ;;  %v130_v50 = vld [vmem:[%s1462_s0 + $0x3d0] sm:$0xff] }
 0x15a   :  { %442 = vst [vmem:[%s1463_s1 + $0x390] sm:$0xff] %v282_v39  ;;  %443 = vst [vmem:[%s1463_s1 + $0x398] sm:$0xff] %v283_v40  ;;  %v288_v51 = vmax.f32 %v128_v48, 0.0  ;;  %v289_v52 = vmax.f32 %v129_v49, 0.0  ;;  %v290_v53 = vmax.f32 %v130_v50, 0.0 }
 0x15b   :  { %444 = vst [vmem:[%s1463_s1 + $0x3a0] sm:$0xff] %v284_v41 }
 0x162   :  { %v131_v54 = vld [vmem:[%s1462_s0 + $0x3d8] sm:$0xff]  ;;  %v132_v55 = vld [vmem:[%s1462_s0 + $0x3e0] sm:$0xff]  ;;  %v133_v56 = vld [vmem:[%s1462_s0 + $0x3e8] sm:$0xff] }
 0x163   :  { %445 = vst [vmem:[%s1463_s1 + $0x3a8] sm:$0xff] %v285_v45  ;;  %446 = vst [vmem:[%s1463_s1 + $0x3b0] sm:$0xff] %v286_v46  ;;  %v291_v57 = vmax.f32 %v131_v54, 0.0  ;;  %v292_v58 = vmax.f32 %v132_v55, 0.0  ;;  %v293_v59 = vmax.f32 %v133_v56, 0.0 }
 0x164   :  { %447 = vst [vmem:[%s1463_s1 + $0x3b8] sm:$0xff] %v287_v47 }
 0x16b   :  { %v134_v60 = vld [vmem:[%s1462_s0 + $0x3f0] sm:$0xff]  ;;  %v135_v61 = vld [vmem:[%s1462_s0 + $0x3f8] sm:$0xff]  ;;  %v136_v62 = vld [vmem:[%s1462_s0 + $0x400] sm:$0xff] }
 0x16c   :  { %448 = vst [vmem:[%s1463_s1 + $0x3c0] sm:$0xff] %v288_v51  ;;  %449 = vst [vmem:[%s1463_s1 + $0x3c8] sm:$0xff] %v289_v52  ;;  %v294_v63 = vmax.f32 %v134_v60, 0.0  ;;  %v295_v0 = vmax.f32 %v135_v61, 0.0  ;;  %v296_v1 = vmax.f32 %v136_v62, 0.0 }
 0x16d   :  { %450 = vst [vmem:[%s1463_s1 + $0x3d0] sm:$0xff] %v290_v53 }
 0x174   :  { %v137_v2 = vld [vmem:[%s1462_s0 + $0x408] sm:$0xff]  ;;  %v138_v3 = vld [vmem:[%s1462_s0 + $0x410] sm:$0xff]  ;;  %v139_v4 = vld [vmem:[%s1462_s0 + $0x418] sm:$0xff] }
 0x175   :  { %451 = vst [vmem:[%s1463_s1 + $0x3d8] sm:$0xff] %v291_v57  ;;  %452 = vst [vmem:[%s1463_s1 + $0x3e0] sm:$0xff] %v292_v58  ;;  %v297_v5 = vmax.f32 %v137_v2, 0.0  ;;  %v298_v6 = vmax.f32 %v138_v3, 0.0  ;;  %v299_v7 = vmax.f32 %v139_v4, 0.0 }
 0x176   :  { %453 = vst [vmem:[%s1463_s1 + $0x3e8] sm:$0xff] %v293_v59 }
 0x17d   :  { %v140_v8 = vld [vmem:[%s1462_s0 + $0x420] sm:$0xff]  ;;  %v141_v9 = vld [vmem:[%s1462_s0 + $0x428] sm:$0xff]  ;;  %v142_v10 = vld [vmem:[%s1462_s0 + $0x430] sm:$0xff] }
 0x17e   :  { %454 = vst [vmem:[%s1463_s1 + $0x3f0] sm:$0xff] %v294_v63  ;;  %455 = vst [vmem:[%s1463_s1 + $0x3f8] sm:$0xff] %v295_v0  ;;  %v300_v11 = vmax.f32 %v140_v8, 0.0  ;;  %v301_v12 = vmax.f32 %v141_v9, 0.0  ;;  %v302_v13 = vmax.f32 %v142_v10, 0.0 }
 0x17f   :  { %456 = vst [vmem:[%s1463_s1 + $0x400] sm:$0xff] %v296_v1 }
 0x186   :  { %v143_v14 = vld [vmem:[%s1462_s0 + $0x438] sm:$0xff]  ;;  %v144_v15 = vld [vmem:[%s1462_s0 + $0x440] sm:$0xff]  ;;  %v145_v16 = vld [vmem:[%s1462_s0 + $0x448] sm:$0xff] }
 0x187   :  { %457 = vst [vmem:[%s1463_s1 + $0x408] sm:$0xff] %v297_v5  ;;  %458 = vst [vmem:[%s1463_s1 + $0x410] sm:$0xff] %v298_v6  ;;  %v303_v17 = vmax.f32 %v143_v14, 0.0  ;;  %v304_v18 = vmax.f32 %v144_v15, 0.0  ;;  %v305_v19 = vmax.f32 %v145_v16, 0.0 }
 0x188   :  { %459 = vst [vmem:[%s1463_s1 + $0x418] sm:$0xff] %v299_v7 }
 0x18f   :  { %v146_v20 = vld [vmem:[%s1462_s0 + $0x450] sm:$0xff]  ;;  %v147_v21 = vld [vmem:[%s1462_s0 + $0x458] sm:$0xff]  ;;  %v148_v22 = vld [vmem:[%s1462_s0 + $0x460] sm:$0xff] }
 0x190   :  { %460 = vst [vmem:[%s1463_s1 + $0x420] sm:$0xff] %v300_v11  ;;  %461 = vst [vmem:[%s1463_s1 + $0x428] sm:$0xff] %v301_v12  ;;  %v306_v23 = vmax.f32 %v146_v20, 0.0  ;;  %v307_v24 = vmax.f32 %v147_v21, 0.0  ;;  %v308_v25 = vmax.f32 %v148_v22, 0.0 }
 0x191   :  { %462 = vst [vmem:[%s1463_s1 + $0x430] sm:$0xff] %v302_v13 }
 0x198   :  { %v149_v26 = vld [vmem:[%s1462_s0 + $0x468] sm:$0xff]  ;;  %v150_v27 = vld [vmem:[%s1462_s0 + $0x470] sm:$0xff]  ;;  %v151_v28 = vld [vmem:[%s1462_s0 + $0x478] sm:$0xff] }
 0x199   :  { %463 = vst [vmem:[%s1463_s1 + $0x438] sm:$0xff] %v303_v17  ;;  %464 = vst [vmem:[%s1463_s1 + $0x440] sm:$0xff] %v304_v18  ;;  %v309_v29 = vmax.f32 %v149_v26, 0.0  ;;  %v310_v30 = vmax.f32 %v150_v27, 0.0  ;;  %v311_v31 = vmax.f32 %v151_v28, 0.0 }
 0x19a   :  { %465 = vst [vmem:[%s1463_s1 + $0x448] sm:$0xff] %v305_v19 }
 0x1a1   :  { %v152_v32 = vld [vmem:[%s1462_s0 + $0x480] sm:$0xff]  ;;  %v153_v33 = vld [vmem:[%s1462_s0 + $0x488] sm:$0xff]  ;;  %v154_v34 = vld [vmem:[%s1462_s0 + $0x490] sm:$0xff] }
 0x1a2   :  { %466 = vst [vmem:[%s1463_s1 + $0x450] sm:$0xff] %v306_v23  ;;  %467 = vst [vmem:[%s1463_s1 + $0x458] sm:$0xff] %v307_v24  ;;  %v312_v35 = vmax.f32 %v152_v32, 0.0  ;;  %v313_v36 = vmax.f32 %v153_v33, 0.0  ;;  %v314_v37 = vmax.f32 %v154_v34, 0.0 }
 0x1a3   :  { %468 = vst [vmem:[%s1463_s1 + $0x460] sm:$0xff] %v308_v25 }
 0x1aa   :  { %v155_v38 = vld [vmem:[%s1462_s0 + $0x498] sm:$0xff]  ;;  %v156_v39 = vld [vmem:[%s1462_s0 + $0x4a0] sm:$0xff]  ;;  %v157_v40 = vld [vmem:[%s1462_s0 + $0x4a8] sm:$0xff] }
 0x1ab   :  { %469 = vst [vmem:[%s1463_s1 + $0x468] sm:$0xff] %v309_v29  ;;  %470 = vst [vmem:[%s1463_s1 + $0x470] sm:$0xff] %v310_v30  ;;  %v315_v41 = vmax.f32 %v155_v38, 0.0  ;;  %v316_v42 = vmax.f32 %v156_v39, 0.0  ;;  %v317_v43 = vmax.f32 %v157_v40, 0.0 }
 0x1ac   :  { %471 = vst [vmem:[%s1463_s1 + $0x478] sm:$0xff] %v311_v31 }
 0x1b3   :  { %v158_v44 = vld [vmem:[%s1462_s0 + $0x4b0] sm:$0xff]  ;;  %v159_v45 = vld [vmem:[%s1462_s0 + $0x4b8] sm:$0xff]  ;;  %v160_v46 = vld [vmem:[%s1462_s0 + $0x4c0] sm:$0xff] }
 0x1b4   :  { %472 = vst [vmem:[%s1463_s1 + $0x480] sm:$0xff] %v312_v35  ;;  %473 = vst [vmem:[%s1463_s1 + $0x488] sm:$0xff] %v313_v36  ;;  %v318_v47 = vmax.f32 %v158_v44, 0.0  ;;  %v319_v48 = vmax.f32 %v159_v45, 0.0  ;;  %v320_v49 = vmax.f32 %v160_v46, 0.0 }
 0x1b5   :  { %474 = vst [vmem:[%s1463_s1 + $0x490] sm:$0xff] %v314_v37 }
 0x1bc   :  { %v161_v50 = vld [vmem:[%s1462_s0 + $0x4c8] sm:$0xff]  ;;  %v162_v51 = vld [vmem:[%s1462_s0 + $0x4d0] sm:$0xff]  ;;  %v163_v52 = vld [vmem:[%s1462_s0 + $0x4d8] sm:$0xff] }
 0x1bd   :  { %475 = vst [vmem:[%s1463_s1 + $0x498] sm:$0xff] %v315_v41  ;;  %476 = vst [vmem:[%s1463_s1 + $0x4a0] sm:$0xff] %v316_v42  ;;  %v321_v53 = vmax.f32 %v161_v50, 0.0  ;;  %v322_v54 = vmax.f32 %v162_v51, 0.0  ;;  %v323_v55 = vmax.f32 %v163_v52, 0.0 }
 0x1be   :  { %477 = vst [vmem:[%s1463_s1 + $0x4a8] sm:$0xff] %v317_v43 }
 0x1c5   :  { %v164_v56 = vld [vmem:[%s1462_s0 + $0x4e0] sm:$0xff]  ;;  %v165_v57 = vld [vmem:[%s1462_s0 + $0x4e8] sm:$0xff]  ;;  %v166_v58 = vld [vmem:[%s1462_s0 + $0x4f0] sm:$0xff] }
 0x1c6   :  { %478 = vst [vmem:[%s1463_s1 + $0x4b0] sm:$0xff] %v318_v47  ;;  %479 = vst [vmem:[%s1463_s1 + $0x4b8] sm:$0xff] %v319_v48  ;;  %v324_v59 = vmax.f32 %v164_v56, 0.0  ;;  %v325_v60 = vmax.f32 %v165_v57, 0.0  ;;  %v326_v61 = vmax.f32 %v166_v58, 0.0 }
 0x1c7   :  { %480 = vst [vmem:[%s1463_s1 + $0x4c0] sm:$0xff] %v320_v49 }
 0x1ce   :  { %v167_v62 = vld [vmem:[%s1462_s0 + $0x4f8] sm:$0xff] }
 0x1cf   :  { %481 = vst [vmem:[%s1463_s1 + $0x4c8] sm:$0xff] %v321_v53  ;;  %482 = vst [vmem:[%s1463_s1 + $0x4d0] sm:$0xff] %v322_v54  ;;  %v327_v63 = vmax.f32 %v167_v62, 0.0 }
 0x1d0   :  { %483 = vst [vmem:[%s1463_s1 + $0x4d8] sm:$0xff] %v323_v55  ;;  %484 = vst [vmem:[%s1463_s1 + $0x4e0] sm:$0xff] %v324_v59 }
 0x1d1   :  { %485 = vst [vmem:[%s1463_s1 + $0x4e8] sm:$0xff] %v325_v60  ;;  %486 = vst [vmem:[%s1463_s1 + $0x4f0] sm:$0xff] %v326_v61 }
 0x1d2   :  { %487 = vst [vmem:[%s1463_s1 + $0x4f8] sm:$0xff] %v327_v63 }

</bundles_post_ra>
